<compile_context>
chip_gen: v7x
topology: tpu7x:2x2x1
jax: 0.10.0
libtpu: 0.0.40
codegen_flags: <defaults>
</compile_context>

<pallas_src>
import functools

import jax
import jax.numpy as jnp
from jax import lax
from jax.experimental import pallas as pl
from jax.experimental.pallas import tpu as pltpu

NUM_OUT = 5
LOSS_FACTOR = 40.0

_LANE = 128
_SUBLANE = 8
_MIN_TILE_LANES = _SUBLANE * _LANE  # 1024 samples = one (8,128) vreg per class


def _hcas_loss_kernel(y_pred_ref, y_true_ref, out_ref, *, classification_mode):
    """One batch tile: inputs are (5, TILE_M, 128) class-major slabs."""
    c, tile_m, lane = y_pred_ref.shape
    yp = y_pred_ref[...].astype(jnp.float32)
    yt = y_true_ref[...].astype(jnp.float32)
    err = yp - yt

    # ---- one-hot label mask: arg{max,min}(y_true) over the class (major) axis ----
    if classification_mode == 'max':
        extreme = jnp.max(yt, axis=0, keepdims=True)
    else:
        extreme = jnp.min(yt, axis=0, keepdims=True)
    class_idx = lax.broadcasted_iota(jnp.int32, (c, tile_m, lane), 0)
    # first class index attaining the extreme (matches torch.arg{max,min} tie-break)
    label = jnp.min(jnp.where(yt == extreme, class_idx, c), axis=0, keepdims=True)
    is_label = class_idx == label                      # one-hot, (5, TILE_M, 128)

    # ---- fused asymmetric MSE ----
    #   label slot:      err < 0 -> 160*(e^2+|e|) else e^2
    #   non-label slot:  err > 0 ->  40*(e^2+|e|) else e^2
    # "penalized" iff (is_label == (err < 0)); weight = 160 for label, 40 otherwise.
    e2 = err * err
    spiked = e2 + jnp.abs(err)
    penalized = is_label == (err < 0.0)
    weight = jnp.where(is_label, LOSS_FACTOR * (NUM_OUT - 1), LOSS_FACTOR)
    loss = jnp.where(penalized, weight * spiked, e2)

    # ---- per-tile partial sum, kept vreg-shaped (VPU adds only, no XLU reduce) ----
    per_class = jnp.sum(loss, axis=0)                                  # (TILE_M, 128)
    out_ref[...] = jnp.sum(
        per_class.reshape(tile_m // _SUBLANE, _SUBLANE, lane), axis=0)  # (8, 128)


def hcas_loss(y_pred, y_true, classification_mode='max', tile_lanes=131072):
    assert classification_mode in ('min', 'max')
    assert y_pred.shape == y_true.shape and y_pred.ndim == 2
    n, c = y_pred.shape
    assert c == NUM_OUT, "HCAS loss assumes num_out = 5 score outputs"

    # Lane-dense layout: (N, 5) -> (5, N).
    # TODO(synk): remove if callers can supply class-major data upstream.
    yp = jnp.transpose(y_pred)
    yt = jnp.transpose(y_true)

    # Tile size: multiple of 8*128 so blocks satisfy the (8, 128) tiling rule,
    # clamped to the (padded) batch extent.
    full_lanes = pl.cdiv(n, _MIN_TILE_LANES) * _MIN_TILE_LANES
    tile_lanes = max(_MIN_TILE_LANES,
                     (int(tile_lanes) // _MIN_TILE_LANES) * _MIN_TILE_LANES)
    tile_lanes = min(tile_lanes, full_lanes)

    n_pad = pl.cdiv(n, tile_lanes) * tile_lanes
    if n_pad != n:
        pad = n_pad - n
        yp = jnp.pad(yp, ((0, 0), (0, pad)))   # zero padding -> zero loss contribution
        yt = jnp.pad(yt, ((0, 0), (0, pad)))

    tile_m = tile_lanes // _LANE               # multiple of 8
    m_total = n_pad // _LANE
    num_tiles = m_total // tile_m

    yp3 = yp.reshape(NUM_OUT, m_total, _LANE)
    yt3 = yt.reshape(NUM_OUT, m_total, _LANE)

    kernel = functools.partial(_hcas_loss_kernel,
                               classification_mode=classification_mode)
    partials = pl.pallas_call(
        kernel,
        out_shape=jax.ShapeDtypeStruct((num_tiles * _SUBLANE, _LANE), jnp.float32),
        grid=(num_tiles,),
        in_specs=[
            pl.BlockSpec((NUM_OUT, tile_m, _LANE), lambda i: (0, i, 0)),
            pl.BlockSpec((NUM_OUT, tile_m, _LANE), lambda i: (0, i, 0)),
        ],
        out_specs=pl.BlockSpec((_SUBLANE, _LANE), lambda i: (i, 0)),
        compiler_params=pltpu.CompilerParams(
            dimension_semantics=("parallel",),
            vmem_limit_bytes=32 * 1024 * 1024,
        ),
    )(yp3, yt3)

    # Final reduction + mean scaling in XLA (tiny array); divide by the TRUE N*5.
    return jnp.sum(partials) * (1.0 / float(n * NUM_OUT))


def hcas_loss_ref(y_pred, y_true, classification_mode='max'):
    """Pure-JAX reference mirroring the PyTorch forward."""
    y_pred = y_pred.astype(jnp.float32)
    y_true = y_true.astype(jnp.float32)
    error = y_pred - y_true
    if classification_mode == 'max':
        labels = jnp.argmax(y_true, axis=1)
    else:
        labels = jnp.argmin(y_true, axis=1)
    one_hot = jax.nn.one_hot(labels, NUM_OUT, dtype=jnp.float32)
    error_optimal = error * one_hot
    error_suboptimal = error * -1.0 * (one_hot - 1.0)
    a = LOSS_FACTOR * (NUM_OUT - 1) * (jnp.square(error_optimal) + jnp.abs(error_optimal))
    b = jnp.square(error_optimal)
    cc = LOSS_FACTOR * (jnp.square(error_suboptimal) + jnp.abs(error_suboptimal))
    d = jnp.square(error_suboptimal)
    loss = jnp.where(error_suboptimal > 0, cc, d) + jnp.where(error_optimal < 0, a, b)
    return jnp.mean(loss)


if __name__ == "__main__":
    key = jax.random.PRNGKey(0)
    k1, k2, k3, k4 = jax.random.split(key, 4)

    ok = True

    # Small case (single tile, heavy zero padding).
    batch_s = 8
    yp_s = jax.random.normal(k1, (batch_s, NUM_OUT), dtype=jnp.float32)
    yt_s = jax.random.normal(k2, (batch_s, NUM_OUT), dtype=jnp.float32)

    # Multi-tile case with a ragged last tile (exercises grid + padding path).
    batch_l = 2000
    yp_l = jax.random.normal(k3, (batch_l, NUM_OUT), dtype=jnp.float32)
    yt_l = jax.random.normal(k4, (batch_l, NUM_OUT), dtype=jnp.float32)

    cases = [
        ("small", yp_s, yt_s, {}),
        ("multi_tile", yp_l, yt_l, {"tile_lanes": 1024}),
        ("default_tile", yp_l, yt_l, {}),
    ]
    for name, yp, yt, kw in cases:
        for mode in ("max", "min"):
            got = jax.block_until_ready(
                hcas_loss(yp, yt, classification_mode=mode, **kw))
            want = jax.block_until_ready(
                hcas_loss_ref(yp, yt, classification_mode=mode))
            if not jnp.allclose(got, want, rtol=1e-5, atol=1e-5):
                ok = False
                print(f"{name} mode={mode}: mismatch pallas={got} ref={want}")

    if ok:
        print("KERNEL_OK")
</pallas_src>

<mosaic_0001>
module attributes {stable_mosaic.version = 11 : i64} {
  func.func @_hcas_loss_kernel(%arg0: i32, %arg1: memref<5x8x128xf32, #tpu.memory_space<vmem>>, %arg2: memref<5x8x128xf32, #tpu.memory_space<vmem>>, %arg3: memref<8x128xf32, #tpu.memory_space<vmem>>) attributes {dimension_semantics = [#tpu.dimension_semantics<parallel>], iteration_bounds = array<i64: 1>, scalar_prefetch = 0 : i64, scratch_operands = 0 : i64, tpu.core_type = #tpu.core_type<tc>, window_params = [{transform_indices = @transform_0, window_bounds = array<i64: 5, 8, 128>}, {transform_indices = @transform_1, window_bounds = array<i64: 5, 8, 128>}, {transform_indices = @transform_2, window_bounds = array<i64: 8, 128>}]} {
    %c0 = arith.constant 0 : index
    %c0_0 = arith.constant 0 : index
    %c0_1 = arith.constant 0 : index
    %0 = vector.load %arg1[%c0, %c0_0, %c0_1] : memref<5x8x128xf32, #tpu.memory_space<vmem>>, vector<5x8x128xf32>
    %c0_2 = arith.constant 0 : index
    %c0_3 = arith.constant 0 : index
    %c0_4 = arith.constant 0 : index
    %1 = vector.load %arg2[%c0_2, %c0_3, %c0_4] : memref<5x8x128xf32, #tpu.memory_space<vmem>>, vector<5x8x128xf32>
    %2 = arith.subf %0, %1 : vector<5x8x128xf32>
    %cst = arith.constant dense<0xFF800000> : vector<8x128xf32>
    %3 = vector.multi_reduction <maximumf>, %1, %cst [0] : vector<5x8x128xf32> to vector<8x128xf32>
    %4 = vector.shape_cast %3 : vector<8x128xf32> to vector<1x8x128xf32>
    %5 = tpu.iota {dimensions = array<i32: 0>} : vector<5x8x128xi32>
    %6 = vector.broadcast %4 : vector<1x8x128xf32> to vector<5x8x128xf32>
    %7 = arith.cmpf oeq, %1, %6 : vector<5x8x128xf32>
    %c5_i32 = arith.constant 5 : i32
    %8 = vector.broadcast %c5_i32 : i32 to vector<5x8x128xi32>
    %9 = arith.select %7, %5, %8 : vector<5x8x128xi1>, vector<5x8x128xi32>
    %cst_5 = arith.constant dense<2147483647> : vector<8x128xi32>
    %10 = vector.multi_reduction <minsi>, %9, %cst_5 [0] : vector<5x8x128xi32> to vector<8x128xi32>
    %11 = vector.shape_cast %10 : vector<8x128xi32> to vector<1x8x128xi32>
    %12 = vector.broadcast %11 : vector<1x8x128xi32> to vector<5x8x128xi32>
    %13 = arith.cmpi eq, %5, %12 : vector<5x8x128xi32>
    %14 = arith.mulf %2, %2 : vector<5x8x128xf32>
    %15 = math.absf %2 : vector<5x8x128xf32>
    %16 = arith.addf %14, %15 : vector<5x8x128xf32>
    %cst_6 = arith.constant 0.000000e+00 : f32
    %17 = vector.broadcast %cst_6 : f32 to vector<5x8x128xf32>
    %18 = arith.cmpf olt, %2, %17 : vector<5x8x128xf32>
    %19 = arith.xori %13, %18 : vector<5x8x128xi1>
    %cst_7 = arith.constant dense<true> : vector<5x8x128xi1>
    %20 = arith.xori %19, %cst_7 : vector<5x8x128xi1>
    %cst_8 = arith.constant 1.600000e+02 : f32
    %cst_9 = arith.constant 4.000000e+01 : f32
    %21 = vector.broadcast %cst_8 : f32 to vector<5x8x128xf32>
    %22 = vector.broadcast %cst_9 : f32 to vector<5x8x128xf32>
    %23 = arith.select %13, %21, %22 : vector<5x8x128xi1>, vector<5x8x128xf32>
    %24 = arith.mulf %23, %16 : vector<5x8x128xf32>
    %25 = arith.select %20, %24, %14 : vector<5x8x128xi1>, vector<5x8x128xf32>
    %cst_10 = arith.constant dense<0.000000e+00> : vector<8x128xf32>
    %26 = vector.multi_reduction <add>, %25, %cst_10 [0] : vector<5x8x128xf32> to vector<8x128xf32>
    %27 = vector.shape_cast %26 : vector<8x128xf32> to vector<1x8x128xf32>
    %cst_11 = arith.constant dense<0.000000e+00> : vector<8x128xf32>
    %28 = vector.multi_reduction <add>, %27, %cst_11 [0] : vector<1x8x128xf32> to vector<8x128xf32>
    %c0_12 = arith.constant 0 : index
    %c0_13 = arith.constant 0 : index
    %29 = vector.load %arg3[%c0_12, %c0_13] : memref<8x128xf32, #tpu.memory_space<vmem>>, vector<8x128xf32>
    tpu.vector_store %arg3[%c0_12, %c0_13], %28 {strides = array<i32>} : memref<8x128xf32, #tpu.memory_space<vmem>>, vector<8x128xf32>,
    return
  }
  func.func @transform_0(%arg0: i32) -> (i32, i32, i32) {
    %c0_i32 = arith.constant 0 : i32
    %c0_i32_0 = arith.constant 0 : i32
    %c0_i32_1 = arith.constant 0 : i32
    return %c0_i32, %arg0, %c0_i32_0 : i32, i32, i32
  }
  func.func @transform_1(%arg0: i32) -> (i32, i32, i32) {
    %c0_i32 = arith.constant 0 : i32
    %c0_i32_0 = arith.constant 0 : i32
    %c0_i32_1 = arith.constant 0 : i32
    return %c0_i32, %arg0, %c0_i32_0 : i32, i32, i32
  }
  func.func @transform_2(%arg0: i32) -> (i32, i32) {
    %c0_i32 = arith.constant 0 : i32
    %c0_i32_0 = arith.constant 0 : i32
    return %arg0, %c0_i32 : i32, i32
  }
}

</mosaic_0001>

<bundles_post_ra>
// kernel: tpu_custom_call.1
= control target key start
LH: loop header
LB: loop body
LE: loop exit
PB: predicated region body
PF: predicated region fallthrough
CT: control target
= control target key end

     0   :  { %7 = vsyncpa [#allocation3], 0  ;;  %s298_s0 = inlined_call_operand.hbm [shape: f32[5,8,128], index: 0, kind: input, shape index: {}]   ;;  %s299_s1 = inlined_call_operand.hbm [shape: f32[5,8,128], index: 1, kind: input, shape index: {}]   ;;  %s300_s2 = inlined_call_operand.hbm [shape: f32[8,128], index: 2, kind: output, shape index: {}]  }
   0x1   :  { %8 = vsyncpa [#allocation6], 0 }
   0x2   :  { %9 = vsyncpa [#allocation4], 0  ;;  %s229_s9 = smov [#allocation2]   ;;  %s157_s13 = scalar_lea.hbm %s298_s0, 640 }
   0x3   :  { %s15_s10 = sshll.u32 %s229_s9, 4  ;;  %p158_p0 = scmp.ne.s32.totalorder %s298_s0, %s157_s13  ;;  %s16_s10 = int_to_ptr.vmem [resolvable:$true] %s15_s10 }
   0x4   :  { %p161_p1 = scmp.lt.u32.totalorder %s157_s13, %s298_s0 }
   0x6   :  { %p163_p2 = pnand %p161_p1, %p158_p0 }
   0x8   :  { %166 = shalt.err (!%p163_p2)
}
   0x9   :  { %s167_s18 = scalar_lea.vmem %s16_s10, 640  ;;  %p172_p4 = scmp.lt.s32.totalorder %s16_s10, %s16_s10 }
   0xa   :  { %p168_p3 = scmp.ne.s32.totalorder %s16_s10, %s167_s18  ;;  %p173_p5 = scmp.lt.s32.totalorder %s167_s18, %s167_s18 }
   0xc   :  { %p174_p6 = por %p173_p5, %p172_p4 }
   0xe   :  { %p175_p7 = pnand %p174_p6, %p168_p3 }
  0x10   :  { %178 = shalt.err (!%p175_p7)
}
  0x11   :  { %s230_s19 = smov 128   ;;  %s231_s20 = smov 8  }
  0x12   :  { %21 = dma.hbm_to_vmem [thread:$0]  %s298_s0, 640, %s16_s10, [#allocation3], %s230_s19, %s230_s19, %s231_s20  }
  0x13   :  { %s232_s23 = smov [#allocation5]   ;;  %s179_s27 = scalar_lea.hbm %s299_s1, 640 }
  0x14   :  { %s27_s24 = sshll.u32 %s232_s23, 4  ;;  %p180_p8 = scmp.ne.s32.totalorder %s299_s1, %s179_s27  ;;  %s28_s24 = int_to_ptr.vmem [resolvable:$true] %s27_s24 }
  0x15   :  { %p183_p9 = scmp.lt.u32.totalorder %s179_s27, %s299_s1 }
  0x17   :  { %p185_p10 = pnand %p183_p9, %p180_p8 }
  0x19   :  { %188 = shalt.err (!%p185_p10)
}
  0x1a   :  { %s189_s4 = scalar_lea.vmem %s28_s24, 640  ;;  %p194_p12 = scmp.lt.s32.totalorder %s28_s24, %s28_s24 }
  0x1b   :  { %p190_p11 = scmp.ne.s32.totalorder %s28_s24, %s189_s4  ;;  %p195_p13 = scmp.lt.s32.totalorder %s189_s4, %s189_s4 }
  0x1d   :  { %p196_p0 = por %p195_p13, %p194_p12 }
  0x1f   :  { %p197_p1 = pnand %p196_p0, %p190_p11 }
  0x21   :  { %200 = shalt.err (!%p197_p1)
}
  0x22   :  { %33 = dma.hbm_to_vmem [thread:$0]  %s299_s1, 640, %s28_s24, [#allocation6], %s230_s19, %s230_s19, %s231_s20  }
  0x23   :  { %223 = dma.done.wait [#allocation3], 640  }
  0x24   :  { %224 = vsyncadd [#allocation3], 4294966656 }
  0x25   :  { %225 = dma.done.wait [#allocation6], 640  }
  0x26   :  { %226 = vsyncadd [#allocation6], 4294966656  ;;  %v45_v0 = vld [vmem:[#allocation5] sm:$0xff]  ;;  %v47_v1 = vld [vmem:[#allocation5 + $0x10] sm:$0xff]  ;;  %v233_v18 = vmov 5   ;;  %v234_v43 = vmov 40.0  }
  0x27   :  { %v48_v2 = vld [vmem:[#allocation5 + $0x18] sm:$0xff]  ;;  %v46_v3 = vld [vmem:[#allocation5 + $0x8] sm:$0xff]  ;;  %v49_v4 = vld [vmem:[#allocation5 + $0x20] sm:$0xff]  ;;  %s236_s1 = smov [#allocation7]  }
  0x28   :  { %v55_v5 = vmax.f32 %v45_v0, %v49_v4  ;;  %v57_v6 = vmax.f32 %v47_v1, %v48_v2  ;;  %v40_v7 = vld [vmem:[#allocation2] sm:$0xff]  ;;  %v41_v8 = vld [vmem:[#allocation2 + $0x8] sm:$0xff]  ;;  %v42_v9 = vld [vmem:[#allocation2 + $0x10] sm:$0xff]  ;;  %s139_s6 = sshll.u32 %s236_s1, 4  ;;  %s140_s6 = int_to_ptr.vmem [resolvable:$true] %s139_s6 }
  0x29   :  { %v43_v11 = vld [vmem:[#allocation2 + $0x18] sm:$0xff]  ;;  %v44_v13 = vld [vmem:[#allocation2 + $0x20] sm:$0xff]  ;;  %v50_v14 = vsub.f32 %v40_v7, %v45_v0  ;;  %v51_v15 = vsub.f32 %v41_v8, %v46_v3  ;;  %v52_v16 = vsub.f32 %v42_v9, %v47_v1  ;;  %s201_s7 = scalar_lea.vmem %s140_s6, 128  ;;  %p206_p3 = scmp.lt.s32.totalorder %s140_s6, %s140_s6 }
  0x2a   :  { %v56_v10 = vmax.f32 %v55_v5, %v46_v3  ;;  %v53_v17 = vsub.f32 %v43_v11, %v48_v2  ;;  %v54_v21 = vsub.f32 %v44_v13, %v49_v4  ;;  %p202_p2 = scmp.ne.s32.totalorder %s140_s6, %s201_s7  ;;  %p207_p4 = scmp.lt.s32.totalorder %s201_s7, %s201_s7 }
  0x2b   :  { %v82_v25 = vmul.f32 %v50_v14, %v50_v14  ;;  %v87_v26 = vand.u32 2147483647, %v50_v14  ;;  %v83_v29 = vmul.f32 %v51_v15, %v51_v15  ;;  %v88_v30 = vand.u32 2147483647, %v51_v15 }
  0x2c   :  { %v58_v12 = vmax.f32 %v56_v10, %v57_v6  ;;  %v84_v31 = vmul.f32 %v52_v16, %v52_v16  ;;  %v85_v32 = vmul.f32 %v53_v17, %v53_v17  ;;  %v86_v34 = vmul.f32 %v54_v21, %v54_v21  ;;  %p208_p5 = por %p207_p4, %p206_p3 }
  0x2d   :  { %v89_v35 = vand.u32 2147483647, %v52_v16  ;;  %v90_v36 = vand.u32 2147483647, %v53_v17  ;;  %v91_v37 = vand.u32 2147483647, %v54_v21  ;;  %v92_v38 = vadd.f32 %v87_v26, %v82_v25 }
  0x2e   :  { %vm59_vm0 = vcmp.eq.f32.partialorder %v45_v0, %v58_v12  ;;  %vm60_vm1 = vcmp.eq.f32.partialorder %v46_v3, %v58_v12  ;;  %vm61_vm2 = vcmp.eq.f32.partialorder %v47_v1, %v58_v12  ;;  %vm62_vm3 = vcmp.eq.f32.partialorder %v48_v2, %v58_v12  ;;  %p209_p6 = pnand %p208_p5, %p202_p2 }
  0x2f   :  { %vm63_vm4 = vcmp.eq.f32.partialorder %v49_v4, %v58_v12  ;;  %v64_v19 = vsel %vm59_vm0, 0, %v233_v18  ;;  %v66_v20 = vsel %vm61_vm2, 2, %v233_v18  ;;  %v65_v22 = vsel %vm60_vm1, 1, %v233_v18 }
  0x30   :  { %v67_v23 = vsel %vm62_vm3, 3, %v233_v18  ;;  %v68_v24 = vsel %vm63_vm4, 4, %v233_v18  ;;  %vm97_vm9 = vcmp.lt.f32.partialorder %v50_v14, 0.0  ;;  %v93_v40 = vadd.f32 %v88_v30, %v83_v29 }
  0x31   :  { %vm69_vm5 = vcmp.lt.s32.totalorder %v64_v19, %v68_v24  ;;  %vm73_vm6 = vcmp.lt.s32.totalorder %v66_v20, %v67_v23  ;;  %vm98_vm10 = vcmp.lt.f32.partialorder %v51_v15, 0.0  ;;  %vm99_vm11 = vcmp.lt.f32.partialorder %v52_v16, 0.0 }
  0x32   :  { %v70_v27 = vsel %vm69_vm5, %v64_v19, %v68_v24  ;;  %v74_v28 = vsel %vm73_vm6, %v66_v20, %v67_v23  ;;  %v94_v41 = vadd.f32 %v89_v35, %v84_v31  ;;  %vm100_vm0 = vcmp.lt.f32.partialorder %v53_v17, 0.0 }
  0x33   :  { %vm71_vm7 = vcmp.lt.s32.totalorder %v70_v27, %v65_v22  ;;  %v95_v46 = vadd.f32 %v90_v36, %v85_v32  ;;  %vm101_vm3 = vcmp.lt.f32.partialorder %v54_v21, 0.0  ;;  %v96_v50 = vadd.f32 %v91_v37, %v86_v34 }
  0x34   :  { %v72_v33 = vsel %vm71_vm7, %v70_v27, %v65_v22 }
  0x35   :  { %vm75_vm8 = vcmp.lt.s32.totalorder %v72_v33, %v74_v28 }
  0x36   :  { %v76_v39 = vsel %vm75_vm8, %v72_v33, %v74_v28  ;;  %vm235_vm8 = vmmov 1  }
  0x37   :  { %vm77_vm12 = vcmp.eq.s32.totalorder %v76_v39, 0  ;;  %vm78_vm13 = vcmp.eq.s32.totalorder %v76_v39, 1  ;;  %vm79_vm14 = vcmp.eq.s32.totalorder %v76_v39, 2  ;;  %vm80_vm15 = vcmp.eq.s32.totalorder %v76_v39, 3 }
  0x38   :  { %vm276_vm1 = vmxor %vm77_vm12, %vm97_vm9  ;;  %v112_v44 = vsel %vm77_vm12, 160.0, %v234_v43  ;;  %v113_v45 = vsel %vm78_vm13, 160.0, %v234_v43  ;;  %vm81_vm2 = vcmp.eq.s32.totalorder %v76_v39, 4  ;;  %v114_v47 = vsel %vm79_vm14, 160.0, %v234_v43 }
  0x39   :  { %vm103_vm4 = vmxor %vm78_vm13, %vm98_vm10  ;;  %v115_v48 = vsel %vm80_vm15, 160.0, %v234_v43  ;;  %v117_v49 = vmul.f32 %v112_v44, %v92_v38  ;;  %v118_v51 = vmul.f32 %v113_v45, %v93_v40  ;;  %v116_v52 = vsel %vm81_vm2, 160.0, %v234_v43 }
  0x3a   :  { %vm104_vm5 = vmxor %vm79_vm14, %vm99_vm11  ;;  %v119_v53 = vmul.f32 %v114_v47, %v94_v41  ;;  %v120_v54 = vmul.f32 %v115_v48, %v95_v46  ;;  %v121_v56 = vmul.f32 %v116_v52, %v96_v50 }
  0x3b   :  { %vm105_vm6 = vmxor %vm80_vm15, %vm100_vm0 }
  0x3c   :  { %vm106_vm7 = vmxor %vm81_vm2, %vm101_vm3 }
  0x3d   :  { %vm107_vm9 = vmxor %vm276_vm1, %vm235_vm8 }
  0x3e   :  { %vm108_vm12 = vmxor %vm103_vm4, %vm235_vm8  ;;  %v122_v55 = vsel %vm107_vm9, %v117_v49, %v82_v25 }
  0x3f   :  { %vm109_vm10 = vmxor %vm104_vm5, %vm235_vm8  ;;  %v123_v57 = vsel %vm108_vm12, %v118_v51, %v83_v29 }
  0x40   :  { %vm110_vm11 = vmxor %vm105_vm6, %vm235_vm8  ;;  %v124_v58 = vsel %vm109_vm10, %v119_v53, %v84_v31  ;;  %v127_v59 = vadd.f32 %v123_v57, %v122_v55 }
  0x41   :  { %vm111_vm13 = vmxor %vm106_vm7, %vm235_vm8  ;;  %v125_v60 = vsel %vm110_vm11, %v120_v54, %v85_v32 }
  0x42   :  { %v128_v61 = vadd.f32 %v127_v59, %v124_v58  ;;  %v126_v62 = vsel %vm111_vm13, %v121_v56, %v86_v34 }
  0x44   :  { %v129_v63 = vadd.f32 %v128_v61, %v125_v60 }
  0x46   :  { %v130_v0 = vadd.f32 %v129_v63, %v126_v62 }
  0x48   :  { %132 = vst [vmem:[#allocation7] sm:$0xff] %v130_v0 }
  0x49   :  { %212 = shalt.err (!%p209_p6)
}
  0x4a   :  { %s213_s10 = scalar_lea.hbm %s300_s2, 128 }
  0x4b   :  { %p214_p7 = scmp.ne.s32.totalorder %s300_s2, %s213_s10  ;;  %p217_p8 = scmp.lt.u32.totalorder %s213_s10, %s300_s2 }
  0x4d   :  { %p219_p9 = pnand %p217_p8, %p214_p7 }
  0x4f   :  { %222 = shalt.err (!%p219_p9)
}
  0x50   :  { %142 = dma.vmem_to_hbm [thread:$0]  %s140_s6, 128, %s300_s2, [#allocation4]  }
  0x51   :  { %227 = dma.done.wait [#allocation4], 128  }
  0x52   :  { %228 = vsyncadd [#allocation4], 4294967168 }
  0x53   :  { %146 = vsyncpa [#allocation3], 1 }
  0x54   :  { %147 = vsyncpa [#allocation6], 1 }
  0x55   :  { %148 = vsyncpa [#allocation4], 1 }

</bundles_post_ra>
